<compile_context>
chip_gen: v6e
topology: v6e:2x2x1
jax: 0.10.0
libtpu: 0.0.40
codegen_flags: <defaults>
</compile_context>

<pallas_src>
import jax
import jax.numpy as jnp
from jax.experimental import pallas as pl
from jax.experimental.pallas import tpu as pltpu

IMAGENET_MEAN = (0.485, 0.456, 0.406)
IMAGENET_STD = (0.229, 0.224, 0.225)

_LANE = 128          # lane width
_SUBLANE_F32 = 8     # f32 sublane tile
_SUBLANE_U8 = 32     # uint8 rows pack 4x along sublanes -> 32-row tiles
_MAX_ROWS_PER_BLOCK = 64


def _round_up(x, m):
    return ((x + m - 1) // m) * m


def _collate_kernel(x_ref, scale_ref, bias_ref, o_ref):
    # x_ref:     (TM, T_HW) uint8   -- TM rows = (image, channel) planes, lane-dense HW
    # scale_ref: (TM, 1)    float32 -- 1 / (255 * std[c]) replicated per row
    # bias_ref:  (TM, 1)    float32 -- -mean[c] / std[c]  replicated per row
    # o_ref:     (TM, T_HW) float32
    x = x_ref[...].astype(jnp.float32)                 # widen in-kernel (u8 read from HBM)
    o_ref[...] = x * scale_ref[...] + bias_ref[...]    # fused ToTensor + Normalize


def _vmem_capacity_bytes():
    try:
        return int(pltpu.get_tpu_info().vmem_capacity_bytes)
    except Exception:
        return 64 * 1024 * 1024  # conservative fallback (v7x per-TC VMEM)


def _block_footprint(tm, t_hw):
    """Padded, double-buffered VMEM bytes for one (in u8 + out f32) block pair."""
    lanes = _round_up(t_hw, _LANE)
    in_b = _round_up(tm, _SUBLANE_U8) * lanes * 1
    out_b = _round_up(tm, _SUBLANE_F32) * lanes * 4
    return 2 * (in_b + out_b)


def _choose_tiling(n_rows, hw):
    vmem_cap = _vmem_capacity_bytes()
    budget = vmem_cap // 2  # leave headroom for compiler scratch / small operands

    tm = min(_round_up(n_rows, _SUBLANE_F32), _MAX_ROWS_PER_BLOCK)

    if _block_footprint(tm, hw) <= budget:
        t_hw = hw                      # whole HW plane per block (lane-dense, no padding)
    else:
        col_bytes = _block_footprint(tm, _LANE)   # per 128-lane column
        n_cols = max(1, budget // col_bytes)
        t_hw = int(n_cols) * _LANE
        while _block_footprint(tm, t_hw) > budget and tm > _SUBLANE_F32:
            tm = max(_SUBLANE_F32, _round_up(tm // 2, _SUBLANE_F32))
        if t_hw >= hw:
            t_hw = hw

    return tm, t_hw, _block_footprint(tm, t_hw), vmem_cap


def generic_collate(batch):
    """batch: list of (uint8 HWC image, fname). Returns (NCHW float32 tensor, fnames)."""
    images = jnp.stack([item[0] for item in batch], axis=0)   # (B, H, W, C) uint8
    fnames = [item[1] for item in batch]

    B, H, W, C = images.shape
    HW = H * W
    R = B * C

    # Bulk uint8 transpose (1 B/elt data movement) + free row-major flatten.
    x_u8 = jnp.transpose(images, (0, 3, 1, 2)).reshape(R, HW)  # (B*C, H*W) uint8

    mean = jnp.asarray(IMAGENET_MEAN[:C], dtype=jnp.float32)
    std = jnp.asarray(IMAGENET_STD[:C], dtype=jnp.float32)
    scale = jnp.tile(1.0 / (255.0 * std), B).reshape(R, 1)     # folds 1/255 and /std
    bias = jnp.tile(-mean / std, B).reshape(R, 1)

    tm, t_hw, footprint, vmem_cap = _choose_tiling(R, HW)

    r_pad = _round_up(R, tm)
    hw_pad = HW if t_hw == HW else _round_up(HW, t_hw)

    if r_pad != R or hw_pad != HW:
        x_u8 = jnp.pad(x_u8, ((0, r_pad - R), (0, hw_pad - HW)))
    if r_pad != R:
        scale = jnp.pad(scale, ((0, r_pad - R), (0, 0)))
        bias = jnp.pad(bias, ((0, r_pad - R), (0, 0)))

    grid = (r_pad // tm, hw_pad // t_hw)

    vmem_limit = int(min(vmem_cap, max(footprint + (4 << 20), 16 << 20)))

    out = pl.pallas_call(
        _collate_kernel,
        out_shape=jax.ShapeDtypeStruct((r_pad, hw_pad), jnp.float32),
        grid_spec=pltpu.PrefetchScalarGridSpec(
            num_scalar_prefetch=0,
            grid=grid,
            in_specs=[
                pl.BlockSpec((tm, t_hw), lambda i, j: (i, j)),  # image/channel row block
                pl.BlockSpec((tm, 1), lambda i, j: (i, 0)),     # per-row scale
                pl.BlockSpec((tm, 1), lambda i, j: (i, 0)),     # per-row bias
            ],
            out_specs=pl.BlockSpec((tm, t_hw), lambda i, j: (i, j)),
        ),
        compiler_params=pltpu.CompilerParams(
            dimension_semantics=("parallel", "parallel"),
            vmem_limit_bytes=vmem_limit,
        ),
    )(x_u8, scale, bias)

    out = out[:R, :HW].reshape(B, C, H, W)
    return out, fnames


if __name__ == "__main__":
    key = jax.random.PRNGKey(0)
    B, H, W, C = 2, 16, 16, 3

    raw = jax.random.randint(key, (B, H, W, C), 0, 256, dtype=jnp.int32).astype(jnp.uint8)
    batch = [(raw[i], f"img_{i}.jpg") for i in range(B)]

    transformed, fnames = generic_collate(batch)
    transformed = jax.block_until_ready(transformed)

    # reference check in plain JAX (original divide-then-subtract formulation)
    mean = jnp.asarray(IMAGENET_MEAN, dtype=jnp.float32)[None, :, None, None]
    std = jnp.asarray(IMAGENET_STD, dtype=jnp.float32)[None, :, None, None]
    ref = (jnp.transpose(raw, (0, 3, 1, 2)).astype(jnp.float32) / 255.0 - mean) / std

    assert transformed.shape == (B, C, H, W)
    assert transformed.dtype == jnp.float32
    assert fnames == ["img_0.jpg", "img_1.jpg"]
    assert jnp.allclose(transformed, ref, atol=1e-5, rtol=1e-5)

    print("KERNEL_OK")
</pallas_src>

<mosaic_0001>
module attributes {stable_mosaic.version = 11 : i64} {
  func.func @_collate_kernel(%arg0: i32, %arg1: i32, %arg2: memref<8x256xi8, #tpu.memory_space<vmem>>, %arg3: memref<8x1xf32, #tpu.memory_space<vmem>>, %arg4: memref<8x1xf32, #tpu.memory_space<vmem>>, %arg5: memref<8x256xf32, #tpu.memory_space<vmem>>) attributes {dimension_semantics = [#tpu.dimension_semantics<parallel>, #tpu.dimension_semantics<parallel>], iteration_bounds = array<i64: 1, 1>, scalar_prefetch = 0 : i64, scratch_operands = 0 : i64, tpu.core_type = #tpu.core_type<tc>, window_params = [{transform_indices = @transform_0, window_bounds = array<i64: 8, 256>}, {transform_indices = @transform_1, window_bounds = array<i64: 8, 1>}, {transform_indices = @transform_2, window_bounds = array<i64: 8, 1>}, {transform_indices = @transform_3, window_bounds = array<i64: 8, 256>}]} {
    %c0 = arith.constant 0 : index
    %c0_0 = arith.constant 0 : index
    %0 = vector.load %arg2[%c0, %c0_0] : memref<8x256xi8, #tpu.memory_space<vmem>>, vector<8x256xi8>
    %1 = arith.uitofp %0 : vector<8x256xi8> to vector<8x256xf32>
    %c0_1 = arith.constant 0 : index
    %c0_2 = arith.constant 0 : index
    %2 = vector.load %arg3[%c0_1, %c0_2] : memref<8x1xf32, #tpu.memory_space<vmem>>, vector<8x1xf32>
    %3 = vector.broadcast %2 : vector<8x1xf32> to vector<8x256xf32>
    %4 = arith.mulf %1, %3 : vector<8x256xf32>
    %c0_3 = arith.constant 0 : index
    %c0_4 = arith.constant 0 : index
    %5 = vector.load %arg4[%c0_3, %c0_4] : memref<8x1xf32, #tpu.memory_space<vmem>>, vector<8x1xf32>
    %6 = vector.broadcast %5 : vector<8x1xf32> to vector<8x256xf32>
    %7 = arith.addf %4, %6 : vector<8x256xf32>
    %c0_5 = arith.constant 0 : index
    %c0_6 = arith.constant 0 : index
    %8 = vector.load %arg5[%c0_5, %c0_6] : memref<8x256xf32, #tpu.memory_space<vmem>>, vector<8x256xf32>
    tpu.vector_store %arg5[%c0_5, %c0_6], %7 {strides = array<i32>} : memref<8x256xf32, #tpu.memory_space<vmem>>, vector<8x256xf32>,
    return
  }
  func.func @transform_0(%arg0: i32, %arg1: i32) -> (i32, i32) {
    %c0_i32 = arith.constant 0 : i32
    return %arg0, %arg1 : i32, i32
  }
  func.func @transform_1(%arg0: i32, %arg1: i32) -> (i32, i32) {
    %c0_i32 = arith.constant 0 : i32
    %c0_i32_0 = arith.constant 0 : i32
    return %arg0, %c0_i32 : i32, i32
  }
  func.func @transform_2(%arg0: i32, %arg1: i32) -> (i32, i32) {
    %c0_i32 = arith.constant 0 : i32
    %c0_i32_0 = arith.constant 0 : i32
    return %arg0, %c0_i32 : i32, i32
  }
  func.func @transform_3(%arg0: i32, %arg1: i32) -> (i32, i32) {
    %c0_i32 = arith.constant 0 : i32
    return %arg0, %arg1 : i32, i32
  }
}

</mosaic_0001>

<bundles_post_ra>
// kernel: tpu_custom_call.1
= control target key start
LH: loop header
LB: loop body
LE: loop exit
PB: predicated region body
PF: predicated region fallthrough
CT: control target
= control target key end

     0   :  { %v79_v1 = vmov 0   ;;  %s113_s0 = inlined_call_operand.vmem [shape: u8[8,256], index: 0, kind: input, shape index: {}]   ;;  %s114_s1 = inlined_call_operand.vmem [shape: f32[8,1], index: 1, kind: input, shape index: {}]   ;;  %s115_s2 = inlined_call_operand.vmem [shape: f32[8,1], index: 2, kind: input, shape index: {}]   ;;  %s116_s3 = inlined_call_operand.hbm [shape: f32[8,256], index: 3, kind: output, shape index: {}]  }
   0x1   :  { %v22_v0 = vld [vmem:[%s114_s1] sm:$0xff]  ;;  %56 = vset.pattern.permute.xlu0 %v79_v1 }
   0x2   :  { %8 = vsyncpa [#allocation3], 0  ;;  %25 = vperm.xlu0 %56, %v22_v0   ;;  %v30_v2 = vld [vmem:[%s115_s2] sm:$0xff]  ;;  %s80_s1 = smov [#allocation2]  }
   0x3   :  { %v15_v3 = vld [vmem:[%s113_s0] sm:$0xf]  ;;  %s46_s18 = sshll.u32 %s80_s1, 4  ;;  %s47_s18 = int_to_ptr.vmem [resolvable:$true] %s46_s18 }
   0x4   :  { %v16_v4 = vunpack.c.0.s8 %v15_v3  ;;  %v17_v5 = vunpack.c.1.s8 %v15_v3  ;;  %s57_s2 = scalar_lea.vmem %s47_s18, 256  ;;  %p62_p1 = scmp.lt.s32.totalorder %s47_s18, %s47_s18 }
   0x5   :  { %p58_p0 = scmp.ne.s32.totalorder %s47_s18, %s57_s2  ;;  %p63_p2 = scmp.lt.s32.totalorder %s57_s2, %s57_s2 }
   0x6   :  { %33 = vperm.xlu0 %56, %v30_v2   ;;  %v18_v6 = vand.u32 255, %v16_v4  ;;  %v19_v7 = vand.u32 255, %v17_v5 }
   0x7   :  { %p64_p3 = por %p63_p2, %p62_p1 }
   0x8   :  { %v20_v8 = vcvt.s32.f32 %v18_v6  ;;  %v21_v9 = vcvt.s32.f32 %v19_v7 }
   0x9   :  { %p65_p4 = pnand %p64_p3, %p58_p0 }
  0x7d   :  { %v26_v10 = vpop.permute.xlu0 %25 }
  0x7e   :  { %v28_v11 = vmul.f32 %v26_v10, %v20_v8  ;;  %v29_v12 = vmul.f32 %v26_v10, %v21_v9 }
  0x81   :  { %v34_v13 = vpop.permute.xlu0 %33 }
  0x82   :  { %v36_v14 = vadd.f32 %v34_v13, %v28_v11  ;;  %v37_v15 = vadd.f32 %v34_v13, %v29_v12 }
  0x84   :  { %38 = vst [vmem:[#allocation2] sm:$0xff] %v36_v14  ;;  %39 = vst [vmem:[#allocation2 + $0x8] sm:$0xff] %v37_v15 }
  0x85   :  { %68 = shalt.err (!%p65_p4)
}
  0x86   :  { %49 = dma.vmem_to_hbm [thread:$0]  %s47_s18, 256, %s116_s3, [#allocation3]  }
  0x87   :  { %77 = dma.done.wait [#allocation3], 256  }
  0x88   :  { %78 = vsyncadd [#allocation3], 4294967040 }
  0x89   :  { %53 = vsyncpa [#allocation3], 1 }

</bundles_post_ra>
